<compile_context>
chip_gen: v7x
topology: tpu7x:2x2x1
jax: 0.10.0
libtpu: 0.0.40
codegen_flags: <defaults>
</compile_context>

<pallas_src>
import functools
import math

import jax
import jax.numpy as jnp
from jax.experimental import pallas as pl
from jax.experimental.pallas import tpu as pltpu

RMS_EPS = 1e-5
VMEM_LIMIT = 64 * 1024 * 1024

# Preferred tile sizes; fall back to the full dim when it does not divide evenly
# (full-dim blocks always satisfy the (8,128) layout rule, which also keeps the
# toy shapes below legal).
TM, TN, TK = 256, 256, 512      # projection matmuls
TQ, TKV = 128, 128              # flash-attention q / kv tiles


def _tile(dim, pref):
    return pref if dim % pref == 0 else dim


# ------------------------------------------------------------------ kernels --

def _norm_matmul_kernel(x_ref, g_ref, w_ref, o_ref, *, eps):
    """RMSNorm prologue fused into a projection matmul (x resident per row block)."""
    xf = x_ref[...].astype(jnp.float32)
    inv = jax.lax.rsqrt(jnp.mean(xf * xf, axis=-1, keepdims=True) + eps)
    xn = (xf * inv * g_ref[...].astype(jnp.float32)).astype(w_ref.dtype)
    o_ref[...] = jnp.dot(xn, w_ref[...],
                         preferred_element_type=jnp.float32).astype(o_ref.dtype)


def norm_matmul(x, gamma, w):
    M, K = x.shape
    _, N = w.shape
    tm, tn = _tile(M, TM), _tile(N, TN)
    kern = functools.partial(_norm_matmul_kernel, eps=RMS_EPS)
    return pl.pallas_call(
        kern,
        out_shape=jax.ShapeDtypeStruct((M, N), x.dtype),
        grid=(M // tm, N // tn),
        in_specs=[pl.BlockSpec((tm, K), lambda i, j: (i, 0)),
                  pl.BlockSpec((1, K), lambda i, j: (0, 0)),
                  pl.BlockSpec((K, tn), lambda i, j: (0, j))],
        out_specs=pl.BlockSpec((tm, tn), lambda i, j: (i, j)),
        compiler_params=pltpu.CompilerParams(
            dimension_semantics=("parallel", "parallel"),
            vmem_limit_bytes=VMEM_LIMIT),
        cost_estimate=pl.CostEstimate(
            flops=2 * M * N * K, transcendentals=0,
            bytes_accessed=2 * (M * K + K * N + M * N)),
    )(x, gamma.reshape(1, K), w)


def _norm_gateup_kernel(x_ref, g_ref, wg_ref, wu_ref, o_ref, *, eps):
    """RMSNorm prologue + gate/up projections + SiLU(gate)*up epilogue."""
    xf = x_ref[...].astype(jnp.float32)
    inv = jax.lax.rsqrt(jnp.mean(xf * xf, axis=-1, keepdims=True) + eps)
    xn = (xf * inv * g_ref[...].astype(jnp.float32)).astype(wg_ref.dtype)
    gate = jnp.dot(xn, wg_ref[...], preferred_element_type=jnp.float32)
    up = jnp.dot(xn, wu_ref[...], preferred_element_type=jnp.float32)
    o_ref[...] = (gate * jax.lax.logistic(gate) * up).astype(o_ref.dtype)


def norm_gateup(x, gamma, w_gate, w_up):
    M, K = x.shape
    _, N = w_gate.shape
    tm, tn = _tile(M, TM), _tile(N, TN)
    kern = functools.partial(_norm_gateup_kernel, eps=RMS_EPS)
    return pl.pallas_call(
        kern,
        out_shape=jax.ShapeDtypeStruct((M, N), x.dtype),
        grid=(M // tm, N // tn),
        in_specs=[pl.BlockSpec((tm, K), lambda i, j: (i, 0)),
                  pl.BlockSpec((1, K), lambda i, j: (0, 0)),
                  pl.BlockSpec((K, tn), lambda i, j: (0, j)),
                  pl.BlockSpec((K, tn), lambda i, j: (0, j))],
        out_specs=pl.BlockSpec((tm, tn), lambda i, j: (i, j)),
        compiler_params=pltpu.CompilerParams(
            dimension_semantics=("parallel", "parallel"),
            vmem_limit_bytes=VMEM_LIMIT),
        cost_estimate=pl.CostEstimate(
            flops=4 * M * N * K, transcendentals=M * N,
            bytes_accessed=2 * (M * K + 2 * K * N + M * N)),
    )(x, gamma.reshape(1, K), w_gate, w_up)


def _matmul_residual_kernel(x_ref, w_ref, r_ref, o_ref, acc_ref):
    """K-tiled matmul with f32 accumulator and residual-add epilogue."""
    k = pl.program_id(2)

    @pl.when(k == 0)
    def _init():
        acc_ref[...] = jnp.zeros(acc_ref.shape, jnp.float32)

    acc_ref[...] += jnp.dot(x_ref[...], w_ref[...],
                            preferred_element_type=jnp.float32)

    @pl.when(k == pl.num_programs(2) - 1)
    def _finalize():
        o_ref[...] = (r_ref[...].astype(jnp.float32)
                      + acc_ref[...]).astype(o_ref.dtype)


def matmul_residual(x, w, res):
    M, K = x.shape
    _, N = w.shape
    tm, tn, tk = _tile(M, TM), _tile(N, TN), _tile(K, TK)
    return pl.pallas_call(
        _matmul_residual_kernel,
        out_shape=jax.ShapeDtypeStruct((M, N), res.dtype),
        grid=(M // tm, N // tn, K // tk),
        in_specs=[pl.BlockSpec((tm, tk), lambda i, j, k: (i, k)),
                  pl.BlockSpec((tk, tn), lambda i, j, k: (k, j)),
                  pl.BlockSpec((tm, tn), lambda i, j, k: (i, j))],
        out_specs=pl.BlockSpec((tm, tn), lambda i, j, k: (i, j)),
        scratch_shapes=[pltpu.VMEM((tm, tn), jnp.float32)],
        compiler_params=pltpu.CompilerParams(
            dimension_semantics=("parallel", "parallel", "arbitrary"),
            vmem_limit_bytes=VMEM_LIMIT),
        cost_estimate=pl.CostEstimate(
            flops=2 * M * N * K, transcendentals=0,
            bytes_accessed=2 * (M * K + K * N + 2 * M * N)),
    )(x, w, res)


def _rmsnorm_kernel(x_ref, g_ref, o_ref, *, eps):
    xf = x_ref[...].astype(jnp.float32)
    inv = jax.lax.rsqrt(jnp.mean(xf * xf, axis=-1, keepdims=True) + eps)
    o_ref[...] = (xf * inv * g_ref[...].astype(jnp.float32)).astype(o_ref.dtype)


def rmsnorm(x, gamma):
    M, D = x.shape
    tm = _tile(M, TM)
    kern = functools.partial(_rmsnorm_kernel, eps=RMS_EPS)
    return pl.pallas_call(
        kern,
        out_shape=jax.ShapeDtypeStruct((M, D), x.dtype),
        grid=(M // tm,),
        in_specs=[pl.BlockSpec((tm, D), lambda i: (i, 0)),
                  pl.BlockSpec((1, D), lambda i: (0, 0))],
        out_specs=pl.BlockSpec((tm, D), lambda i: (i, 0)),
        compiler_params=pltpu.CompilerParams(
            dimension_semantics=("parallel",),
            vmem_limit_bytes=VMEM_LIMIT),
    )(x, gamma.reshape(1, D))


def _flash_attn_kernel(q_ref, k_ref, v_ref, rot_ref, cq_ref, sq_ref, ck_ref,
                       sk_ref, o_ref, m_ref, l_ref, acc_ref, *, tq, tkv, scale):
    """Flash-style causal attention with fused interleaved RoPE and GQA."""
    qi = pl.program_id(2)
    ki = pl.program_id(3)
    nkv = pl.num_programs(3)

    @pl.when(ki == 0)
    def _init():
        m_ref[...] = jnp.full(m_ref.shape, -jnp.inf, jnp.float32)
        l_ref[...] = jnp.zeros(l_ref.shape, jnp.float32)
        acc_ref[...] = jnp.zeros(acc_ref.shape, jnp.float32)

    q_start = qi * tq
    kv_start = ki * tkv

    # Causal block skip: KV blocks strictly above the diagonal contribute nothing.
    @pl.when(kv_start < q_start + tq)
    def _compute():
        rot = rot_ref[...]
        q = q_ref[...].astype(jnp.float32)
        k = k_ref[...].astype(jnp.float32)
        # Interleaved RoPE fused in-kernel: out = x*cos + (x @ R)*sin where R
        # swaps each (even, odd) lane pair with a sign flip (tiny MXU matmul,
        # avoids lane-strided shuffles). Softmax scale folded into q.
        q = q * cq_ref[...] + jnp.dot(q, rot,
                                      preferred_element_type=jnp.float32) * sq_ref[...]
        k = k * ck_ref[...] + jnp.dot(k, rot,
                                      preferred_element_type=jnp.float32) * sk_ref[...]
        q = q * scale

        s = jax.lax.dot_general(q, k, (((1,), (1,)), ((), ())),
                                preferred_element_type=jnp.float32)   # (tq, tkv)
        row = q_start + jax.lax.broadcasted_iota(jnp.int32, (tq, tkv), 0)
        col = kv_start + jax.lax.broadcasted_iota(jnp.int32, (tq, tkv), 1)
        s = jnp.where(col <= row, s, -1e30)                           # causal mask

        m_prev = m_ref[...]
        m_new = jnp.maximum(m_prev, jnp.max(s, axis=-1, keepdims=True))
        alpha = jnp.exp(m_prev - m_new)
        p = jnp.exp(s - m_new)
        l_ref[...] = alpha * l_ref[...] + jnp.sum(p, axis=-1, keepdims=True)
        acc_ref[...] = alpha * acc_ref[...] + jnp.dot(
            p.astype(v_ref.dtype), v_ref[...], preferred_element_type=jnp.float32)
        m_ref[...] = m_new

    @pl.when(ki == nkv - 1)
    def _finalize():
        o_ref[...] = (acc_ref[...]
                      * pl.reciprocal(l_ref[...], approx=True)).astype(o_ref.dtype)


def flash_attention(qkv, n_heads, n_kv_heads, cos_f, sin_f, rot_mat, out_dtype):
    """qkv: (B, H + 2*Hkv, S, Dh) head-major fused-QKV tensor; returns (B, H, S, Dh)."""
    B, HT, S, Dh = qkv.shape
    H, Hkv = n_heads, n_kv_heads
    rep = H // Hkv
    tq = _tile(S, TQ)
    tkv = _tile(S, TKV)
    scale = 1.0 / math.sqrt(Dh)

    # q / k / v are all read from the same fused-QKV tensor; GQA head sharing is
    # pure index_map addressing (no jnp.repeat, no slicing copies).
    q_spec = pl.BlockSpec((None, None, tq, Dh), lambda b, h, qi, ki: (b, h, qi, 0))
    k_spec = pl.BlockSpec((None, None, tkv, Dh),
                          lambda b, h, qi, ki: (b, H + h // rep, ki, 0))
    v_spec = pl.BlockSpec((None, None, tkv, Dh),
                          lambda b, h, qi, ki: (b, H + Hkv + h // rep, ki, 0))
    rot_spec = pl.BlockSpec((Dh, Dh), lambda b, h, qi, ki: (0, 0))
    cq_spec = pl.BlockSpec((tq, Dh), lambda b, h, qi, ki: (qi, 0))
    ck_spec = pl.BlockSpec((tkv, Dh), lambda b, h, qi, ki: (ki, 0))
    o_spec = pl.BlockSpec((None, None, tq, Dh), lambda b, h, qi, ki: (b, h, qi, 0))

    kern = functools.partial(_flash_attn_kernel, tq=tq, tkv=tkv, scale=scale)
    return pl.pallas_call(
        kern,
        out_shape=jax.ShapeDtypeStruct((B, H, S, Dh), out_dtype),
        grid=(B, H, S // tq, S // tkv),
        in_specs=[q_spec, k_spec, v_spec, rot_spec,
                  cq_spec, cq_spec, ck_spec, ck_spec],
        out_specs=o_spec,
        scratch_shapes=[pltpu.VMEM((tq, 1), jnp.float32),
                        pltpu.VMEM((tq, 1), jnp.float32),
                        pltpu.VMEM((tq, Dh), jnp.float32)],
        compiler_params=pltpu.CompilerParams(
            dimension_semantics=("parallel", "parallel", "parallel", "arbitrary"),
            vmem_limit_bytes=VMEM_LIMIT),
        cost_estimate=pl.CostEstimate(
            flops=4 * B * H * S * S * Dh,
            transcendentals=B * H * S * S,
            bytes_accessed=2 * B * S * Dh * (HT + H)),
    )(qkv, qkv, qkv, rot_mat, cos_f, sin_f, cos_f, sin_f)


# ----------------------------------------------------------------- JAX glue --

def rope_tables(seqlen, head_dim, theta=10000.0):
    """Interleave-expanded cos/sin tables + the pair-rotation matrix R (hoisted once)."""
    freqs = 1.0 / (theta ** (jnp.arange(0, head_dim, 2, dtype=jnp.float32) / head_dim))
    ang = jnp.outer(jnp.arange(seqlen, dtype=jnp.float32), freqs)     # (S, Dh//2)
    cos = jnp.repeat(jnp.cos(ang), 2, axis=-1)                        # (S, Dh)
    sin = jnp.repeat(jnp.sin(ang), 2, axis=-1)
    i = jnp.arange(head_dim)[:, None]
    j = jnp.arange(head_dim)[None, :]
    rot = (((j == i + 1) & (i % 2 == 0)).astype(jnp.float32)
           - ((j == i - 1) & (i % 2 == 1)).astype(jnp.float32))       # (Dh, Dh)
    return cos, sin, rot


def llama_block(h2d, blk, B, S, n_heads, n_kv_heads, cos_f, sin_f, rot_mat):
    D = h2d.shape[-1]
    Dh = D // n_heads
    HT = n_heads + 2 * n_kv_heads

    # input RMSNorm fused into the fused-QKV projection.
    qkv = norm_matmul(h2d, blk["ln1_g"], blk["w_qkv"])                # (B*S, HT*Dh)
    qkv4 = qkv.reshape(B, S, HT, Dh).transpose(0, 2, 1, 3)            # (B, HT, S, Dh)
    # TODO(synk): when head_dim % 128 == 0 this transpose (and the one below) can
    # be folded into the QKV out_spec / o_proj in_spec index_maps; kept as XLA
    # glue so the small head_dim used here stays layout-legal.

    attn = flash_attention(qkv4, n_heads, n_kv_heads, cos_f, sin_f, rot_mat,
                           h2d.dtype)                                  # (B, H, S, Dh)
    attn2d = attn.transpose(0, 2, 1, 3).reshape(B * S, D)

    # o_proj with the first residual add fused into the epilogue.
    h2d = matmul_residual(attn2d, blk["w_o"], h2d)

    # post-attention RMSNorm + gate/up projections + SiLU(gate)*up epilogue.
    mlp_h = norm_gateup(h2d, blk["ln2_g"], blk["w_gate"], blk["w_up"])
    # down_proj with the second residual add fused into the epilogue.
    h2d = matmul_residual(mlp_h, blk["w_down"], h2d)
    return h2d


def llama_forward(input_ids, params):
    # TODO(synk): prepare_input_ids bookkeeping, start_pos and the fused KV cache
    # (past_key_values) are stateful host-side decode logic; this implements a
    # single full-sequence forward with start_pos=0 (causal mask, no cache).
    B, S = input_ids.shape
    emb = params["word_embeddings"]
    D = emb.shape[1]
    H, Hkv = params["n_heads"], params["n_kv_heads"]
    Dh = D // H

    h2d = jnp.take(emb, input_ids.reshape(-1), axis=0)                # embedding gather (glue)
    cos_f, sin_f, rot_mat = rope_tables(S, Dh)                        # hoisted: shared by all layers

    for blk in params["blocks"]:
        h2d = llama_block(h2d, blk, B, S, H, Hkv, cos_f, sin_f, rot_mat)

    h2d = rmsnorm(h2d, params["ln_f_g"])
    return h2d.reshape(B, S, D)


# -------------------------------------------------------------- init / main --

def init_params(key, vocab_size, hidden, ffn, n_heads, n_kv_heads, n_layers,
                dtype=jnp.bfloat16):
    Dh = hidden // n_heads
    qkv_out = (n_heads + 2 * n_kv_heads) * Dh
    params = {"n_heads": n_heads, "n_kv_heads": n_kv_heads}
    key, k_emb = jax.random.split(key)
    params["word_embeddings"] = (
        0.02 * jax.random.normal(k_emb, (vocab_size, hidden), jnp.float32)
    ).astype(dtype)
    blocks = []
    for _ in range(n_layers):
        key, k1, k2, k3, k4, k5 = jax.random.split(key, 6)
        blocks.append({
            "ln1_g": jnp.ones((hidden,), jnp.float32),
            "ln2_g": jnp.ones((hidden,), jnp.float32),
            "w_qkv": (0.02 * jax.random.normal(k1, (hidden, qkv_out), jnp.float32)).astype(dtype),
            "w_o": (0.02 * jax.random.normal(k2, (hidden, hidden), jnp.float32)).astype(dtype),
            "w_gate": (0.02 * jax.random.normal(k3, (hidden, ffn), jnp.float32)).astype(dtype),
            "w_up": (0.02 * jax.random.normal(k4, (hidden, ffn), jnp.float32)).astype(dtype),
            "w_down": (0.02 * jax.random.normal(k5, (ffn, hidden), jnp.float32)).astype(dtype),
        })
    params["blocks"] = blocks
    params["ln_f_g"] = jnp.ones((hidden,), jnp.float32)
    return params


if __name__ == "__main__":
    vocab_size = 64
    hidden = 32
    ffn = 64
    n_heads = 4
    n_kv_heads = 2
    n_layers = 2
    batch, seqlen = 2, 8

    key = jax.random.PRNGKey(0)
    key, k_ids = jax.random.split(key)
    params = init_params(key, vocab_size, hidden, ffn, n_heads, n_kv_heads, n_layers)
    input_ids = jax.random.randint(k_ids, (batch, seqlen), 0, vocab_size, jnp.int32)

    out = llama_forward(input_ids, params)
    out = jax.block_until_ready(out)
    assert out.shape == (batch, seqlen, hidden)
    assert bool(jnp.all(jnp.isfinite(out.astype(jnp.float32))))
    print("KERNEL_OK")
</pallas_src>

<mosaic_0001>
module attributes {stable_mosaic.version = 11 : i64} {
  func.func @_norm_matmul_kernel(%arg0: i32, %arg1: i32, %arg2: memref<16x32xbf16, #tpu.memory_space<vmem>>, %arg3: memref<1x32xf32, #tpu.memory_space<vmem>>, %arg4: memref<32x64xbf16, #tpu.memory_space<vmem>>, %arg5: memref<16x64xbf16, #tpu.memory_space<vmem>>) attributes {dimension_semantics = [#tpu.dimension_semantics<parallel>, #tpu.dimension_semantics<parallel>], iteration_bounds = array<i64: 1, 1>, scalar_prefetch = 0 : i64, scratch_operands = 0 : i64, tpu.core_type = #tpu.core_type<tc>, window_params = [{transform_indices = @transform_0, window_bounds = array<i64: 16, 32>}, {pipeline_mode = #tpu.pipeline_mode<synchronous>, transform_indices = @transform_1, window_bounds = array<i64: 1, 32>}, {transform_indices = @transform_2, window_bounds = array<i64: 32, 64>}, {transform_indices = @transform_3, window_bounds = array<i64: 16, 64>}]} {
    %c0 = arith.constant 0 : index
    %c0_0 = arith.constant 0 : index
    %0 = vector.load %arg2[%c0, %c0_0] : memref<16x32xbf16, #tpu.memory_space<vmem>>, vector<16x32xbf16>
    %1 = arith.extf %0 : vector<16x32xbf16> to vector<16x32xf32>
    %2 = arith.mulf %1, %1 : vector<16x32xf32>
    %cst = arith.constant dense<0.000000e+00> : vector<16xf32>
    %3 = vector.multi_reduction <add>, %2, %cst [1] : vector<16x32xf32> to vector<16xf32>
    %4 = vector.shape_cast %3 : vector<16xf32> to vector<16x1xf32>
    %cst_1 = arith.constant 3.200000e+01 : f32
    %5 = vector.broadcast %cst_1 : f32 to vector<16x1xf32>
    %6 = arith.divf %4, %5 : vector<16x1xf32>
    %cst_2 = arith.constant 9.99999974E-6 : f32
    %7 = vector.broadcast %cst_2 : f32 to vector<16x1xf32>
    %8 = arith.addf %6, %7 : vector<16x1xf32>
    %9 = math.rsqrt %8 : vector<16x1xf32>
    %10 = vector.broadcast %9 : vector<16x1xf32> to vector<16x32xf32>
    %11 = arith.mulf %1, %10 : vector<16x32xf32>
    %c0_3 = arith.constant 0 : index
    %c0_4 = arith.constant 0 : index
    %12 = vector.load %arg3[%c0_3, %c0_4] : memref<1x32xf32, #tpu.memory_space<vmem>>, vector<1x32xf32>
    %13 = vector.broadcast %12 : vector<1x32xf32> to vector<16x32xf32>
    %14 = arith.mulf %11, %13 : vector<16x32xf32>
    %15 = arith.truncf %14 : vector<16x32xf32> to vector<16x32xbf16>
    %c0_5 = arith.constant 0 : index
    %c0_6 = arith.constant 0 : index
    %16 = vector.load %arg4[%c0_5, %c0_6] : memref<32x64xbf16, #tpu.memory_space<vmem>>, vector<32x64xbf16>
    %cst_7 = arith.constant dense<0.000000e+00> : vector<16x64xf32>
    %17 = tpu.matmul %15, %16, %cst_7 {dimension_numbers = #tpu.dot_dimension_numbers<[1], [0], [0], [1], [0, 0, 1, 1], [], []>} : vector<16x32xbf16>, vector<32x64xbf16>, vector<16x64xf32> -> vector<16x64xf32>
    %18 = arith.truncf %17 : vector<16x64xf32> to vector<16x64xbf16>
    %c0_8 = arith.constant 0 : index
    %c0_9 = arith.constant 0 : index
    %19 = vector.load %arg5[%c0_8, %c0_9] : memref<16x64xbf16, #tpu.memory_space<vmem>>, vector<16x64xbf16>
    tpu.vector_store %arg5[%c0_8, %c0_9], %18 {strides = array<i32>} : memref<16x64xbf16, #tpu.memory_space<vmem>>, vector<16x64xbf16>,
    return
  }
  func.func @transform_0(%arg0: i32, %arg1: i32) -> (i32, i32) {
    %c0_i32 = arith.constant 0 : i32
    %c0_i32_0 = arith.constant 0 : i32
    return %arg0, %c0_i32 : i32, i32
  }
  func.func @transform_1(%arg0: i32, %arg1: i32) -> (i32, i32) {
    %c0_i32 = arith.constant 0 : i32
    %c0_i32_0 = arith.constant 0 : i32
    %c0_i32_1 = arith.constant 0 : i32
    return %c0_i32, %c0_i32_0 : i32, i32
  }
  func.func @transform_2(%arg0: i32, %arg1: i32) -> (i32, i32) {
    %c0_i32 = arith.constant 0 : i32
    %c0_i32_0 = arith.constant 0 : i32
    return %c0_i32, %arg1 : i32, i32
  }
  func.func @transform_3(%arg0: i32, %arg1: i32) -> (i32, i32) {
    %c0_i32 = arith.constant 0 : i32
    return %arg0, %arg1 : i32, i32
  }
}

</mosaic_0001>

<bundles_post_ra>
// kernel: tpu_custom_call.1
= control target key start
LH: loop header
LB: loop body
LE: loop exit
PB: predicated region body
PF: predicated region fallthrough
CT: control target
= control target key end

     0   :  { %8 = vsyncpa [#allocation3], 0  ;;  %s402_s0 = inlined_call_operand.hbm [shape: bf16[16,32], index: 0, kind: input, shape index: {}]   ;;  %s403_s1 = inlined_call_operand.hbm [shape: f32[1,32], index: 1, kind: input, shape index: {}]   ;;  %s404_s2 = inlined_call_operand.hbm [shape: bf16[32,64], index: 2, kind: input, shape index: {}]   ;;  %s405_s3 = inlined_call_operand.hbm [shape: bf16[16,64], index: 3, kind: output, shape index: {}]  }
   0x1   :  { %9 = vsyncpa [#allocation6], 0 }
   0x2   :  { %10 = vsyncpa [#allocation4], 0  ;;  %s307_s12 = smov [#allocation5]   ;;  %s308_s14 = smov [#allocation2]  }
   0x3   :  { %s29_s13 = sshll.u32 %s307_s12, 4  ;;  %s16_s15 = sshll.u32 %s308_s14, 4  ;;  %s30_s13 = int_to_ptr.vmem [resolvable:$true] %s29_s13  ;;  %s335_s15 = int_to_ptr.vmem [resolvable:$true] %s16_s15 }
   0x4   :  { %s213_s18 = scalar_lea.hbm %s403_s1, 16 }
   0x5   :  { %p214_p0 = scmp.ne.s32.totalorder %s403_s1, %s213_s18  ;;  %p217_p1 = scmp.lt.u32.totalorder %s213_s18, %s403_s1 }
   0x7   :  { %p219_p2 = pnand %p217_p1, %p214_p0 }
   0x9   :  { %222 = shalt.err (!%p219_p2)
}
   0xa   :  { %s223_s23 = scalar_lea.vmem %s30_s13, 16  ;;  %s227_s24 = scalar_lea.vmem %s30_s13, 32 }
   0xb   :  { %p224_p3 = scmp.ne.s32.totalorder %s30_s13, %s223_s23  ;;  %p228_p4 = scmp.lt.s32.totalorder %s30_s13, %s30_s13 }
   0xc   :  { %p229_p5 = scmp.lt.s32.totalorder %s227_s24, %s223_s23 }
   0xe   :  { %p230_p6 = por %p229_p5, %p228_p4 }
  0x10   :  { %p231_p7 = pnand %p230_p6, %p224_p3 }
  0x12   :  { %234 = shalt.err (!%p231_p7)
}
  0x13   :  { %32 = dma.hbm_to_vmem [thread:$0]  %s403_s1, 16, %s30_s13, [#allocation6]  }
  0x14   :  { %s235_s29 = scalar_lea.hbm %s402_s0, 128 }
  0x15   :  { %p236_p8 = scmp.ne.s32.totalorder %s402_s0, %s235_s29  ;;  %p239_p9 = scmp.lt.u32.totalorder %s235_s29, %s402_s0 }
  0x17   :  { %p241_p10 = pnand %p239_p9, %p236_p8 }
  0x19   :  { %244 = shalt.err (!%p241_p10)
}
  0x1a   :  { %s245_s7 = scalar_lea.vmem %s335_s15, 128  ;;  %p250_p12 = scmp.lt.s32.totalorder %s335_s15, %s335_s15 }
  0x1b   :  { %p246_p11 = scmp.ne.s32.totalorder %s335_s15, %s245_s7  ;;  %p251_p13 = scmp.lt.s32.totalorder %s245_s7, %s245_s7 }
  0x1d   :  { %p252_p0 = por %p251_p13, %p250_p12 }
  0x1f   :  { %p253_p1 = pnand %p252_p0, %p246_p11 }
  0x21   :  { %256 = shalt.err (!%p253_p1)
}
  0x22   :  { %s309_s1 = smov 64   ;;  %s310_s8 = smov 4  }
  0x23   :  { %22 = dma.hbm_to_vmem [thread:$0]  %s402_s0, 128, %s335_s15, [#allocation3], %s309_s1, %s309_s1, %s310_s8  }
  0x24   :  { %s311_s11 = smov [#allocation7]   ;;  %s257_s16 = scalar_lea.hbm %s404_s2, 256 }
  0x25   :  { %s38_s12 = sshll.u32 %s311_s11, 4  ;;  %p258_p2 = scmp.ne.s32.totalorder %s404_s2, %s257_s16  ;;  %s39_s12 = int_to_ptr.vmem [resolvable:$true] %s38_s12 }
  0x26   :  { %p261_p3 = scmp.lt.u32.totalorder %s257_s16, %s404_s2 }
  0x28   :  { %p263_p4 = pnand %p261_p3, %p258_p2 }
  0x2a   :  { %266 = shalt.err (!%p263_p4)
}
  0x2b   :  { %s267_s21 = scalar_lea.vmem %s39_s12, 256  ;;  %p272_p6 = scmp.lt.s32.totalorder %s39_s12, %s39_s12 }
  0x2c   :  { %p268_p5 = scmp.ne.s32.totalorder %s39_s12, %s267_s21  ;;  %p273_p7 = scmp.lt.s32.totalorder %s267_s21, %s267_s21 }
  0x2e   :  { %p274_p8 = por %p273_p7, %p272_p6 }
  0x30   :  { %p275_p9 = pnand %p274_p8, %p268_p5 }
  0x32   :  { %278 = shalt.err (!%p275_p9)
}
  0x33   :  { %44 = dma.hbm_to_vmem [thread:$0]  %s404_s2, 256, %s39_s12, [#allocation6], %s309_s1, %s309_s1, %s310_s8  }
  0x34   :  { %301 = dma.done.wait [#allocation3], 128  }
  0x35   :  { %302 = vsyncadd [#allocation3], 4294967168 }
  0x36   :  { %303 = dma.done.wait [#allocation6], 272  }
  0x37   :  { %304 = vsyncadd [#allocation6], 4294967024  ;;  %v185_v0 = vld [vmem:[#allocation2] sm:$0xff]   ;;  %vm61_vm0 = vcmask 261120   ;;  %v207_v7 = vld [vmem:[#allocation7] sm:$0xff]   ;;  %v312_v8 = vmov 0.0  }
  0x38   :  { %v186_v1 = vunpack.c.l.bf16 %v185_v0  ;;  %v187_v2 = vunpack.c.h.bf16 %v185_v0  ;;  %191 = vmatprep.subr.bf16.mxu0 %v312_v8  ;;  %vm313_vm1 = vmmov 0   ;;  %v208_v9 = vld [vmem:[#allocation7 + $0x8] sm:$0xff]   ;;  %v176_v19 = vld [vmem:[#allocation5] ss:$0 sm:$0xff]  ;;  %vm155_vm2 = vcmask 519168   ;;  %s314_s2 = smov [#allocation8]  }
  0x39   :  { %195 = vmatprep.mubr.msk.bf16.mxu0 %vm313_vm1, %v312_v8  ;;  %192 = vmatpush3.bf16.msra.mxu0 %v207_v7  ;;  %s163_s22 = sshll.u32 %s314_s2, 4  ;;  %s164_s22 = int_to_ptr.vmem [resolvable:$true] %s163_s22 }
  0x3a   :  { %v59_v3 = vmul.f32 %v186_v1, %v186_v1  ;;  %v60_v4 = vmul.f32 %v187_v2, %v187_v2  ;;  %193 = vmatprep.subr.bf16.mxu0 %v312_v8  ;;  %s279_s23 = scalar_lea.vmem %s164_s22, 128  ;;  %p284_p11 = scmp.lt.s32.totalorder %s164_s22, %s164_s22 }
  0x3b   :  { %p280_p10 = scmp.ne.s32.totalorder %s164_s22, %s279_s23  ;;  %p285_p12 = scmp.lt.s32.totalorder %s279_s23, %s279_s23 }
  0x3c   :  { %v62_v5 = vsel %vm61_vm0, %v59_v3, 0.0  ;;  %v65_v6 = vsel %vm61_vm0, %v60_v4, 0.0 }
  0x3d   :  { %63 = vadd.xlane.f32.xlu0 %v62_v5  ;;  %194 = vmatpush3.bf16.msra.mxu0 %v208_v9  ;;  %p286_p13 = por %p285_p12, %p284_p11 }
  0x3f   :  { %p287_p0 = pnand %p286_p13, %p280_p10 }
  0x41   :  { %66 = vadd.xlane.f32.xlu0 %v65_v6 }
  0xca   :  { %v64_v10 = vpop.xlane.xlu0 %63 }
  0xcb   :  { %v69_v11 = vmul.f32 0.03125, %v64_v10 }
  0xcd   :  { %v71_v12 = vadd.f32 1e-05, %v69_v11 }
  0xce   :  { %v67_v13 = vpop.xlane.xlu0 %66 }
  0xcf   :  { %209 = vrsqrt.f32 %v71_v12  ;;  %v70_v14 = vmul.f32 0.03125, %v67_v13 }
  0xd1   :  { %v72_v15 = vadd.f32 1e-05, %v70_v14 }
  0xd3   :  { %211 = vrsqrt.f32 %v72_v15 }
  0xd9   :  { %v210_v16 = vpop.eup %209 }
  0xda   :  { %v75_v17 = vmul.f32 %v210_v16, %v186_v1 }
  0xdc   :  { %v84_v21 = vmul.f32 %v176_v19, %v75_v17 }
  0xdd   :  { %v212_v18 = vpop.eup %211 }
  0xde   :  { %v76_v20 = vmul.f32 %v212_v18, %v187_v2 }
  0xe0   :  { %v85_v22 = vmul.f32 %v176_v19, %v76_v20 }
  0xe2   :  { %v86_v23 = vpack.c.bf16 %v85_v22, %v84_v21 }
  0xe4   :  { %196 = vmatmul.mubr.msk.bf16.vlgmr.msra.gmra.mrb[0].mxu0 %vm61_vm0, %v86_v23 }
 0x1b7   :  { %v140_v24 = vpop.f32.mrb[0].mxu0 }
 0x1b8   :  { %v182_v25 = vpack.c.bf16 %v140_v24, %v140_v24  ;;  %v197_v26 = vpop.f32.mrb[1].mxu0 }
 0x1b9   :  { %v143_v27 = vpop.f32.mrb[2].mxu0 }
 0x1ba   :  { %v183_v28 = vpack.c.bf16 %v143_v27, %v143_v27  ;;  %v198_v29 = vpop.f32.mrb[3].mxu0  ;;  %156 = vst.msk [vmem:[#allocation8] sm:$0xf] %vm155_vm2, %v182_v25 }
 0x1bc   :  { %157 = vst.msk [vmem:[#allocation8 + $0x4] sm:$0xf] %vm155_vm2, %v183_v28 }
 0x1bd   :  { %290 = shalt.err (!%p287_p0)
}
 0x1be   :  { %s291_s26 = scalar_lea.hbm %s405_s3, 128 }
 0x1bf   :  { %p292_p1 = scmp.ne.s32.totalorder %s405_s3, %s291_s26  ;;  %p295_p2 = scmp.lt.u32.totalorder %s291_s26, %s405_s3 }
 0x1c1   :  { %p297_p3 = pnand %p295_p2, %p292_p1 }
 0x1c3   :  { %300 = shalt.err (!%p297_p3)
}
 0x1c4   :  { %169 = dma.vmem_to_hbm [thread:$0]  %s164_s22, 128, %s405_s3, [#allocation4], %s309_s1, %s309_s1, %s310_s8  }
 0x1c5   :  { %305 = dma.done.wait [#allocation4], 128  }
 0x1c6   :  { %306 = vsyncadd [#allocation4], 4294967168 }
 0x1c7   :  { %173 = vsyncpa [#allocation3], 1 }
 0x1c8   :  { %174 = vsyncpa [#allocation6], 1 }
 0x1c9   :  { %175 = vsyncpa [#allocation4], 1 }

</bundles_post_ra>
